<compile_context>
chip_gen: v7x
topology: tpu7x:2x2x1
jax: 0.10.0
libtpu: 0.0.40
codegen_flags: <defaults>
</compile_context>

<pallas_src>
import functools

import jax
import jax.numpy as jnp
from jax.experimental import pallas as pl
from jax.experimental.pallas import tpu as pltpu


def transformer_input_kernel(ids_ref, table_ref, pos_ref, inv_freq_ref, out_ref, *, seq_tile):
    # ids_ref:      SMEM (S*B,) int32   token ids in output-row order (scalar prefetch)
    # table_ref:    VMEM (V, E)         embedding table (resident, constant-index block)
    # pos_ref:      VMEM (TB, 1) f32    local sequence position of each row (r // B)
    # inv_freq_ref: VMEM (1, half) f32  rotary inverse frequencies
    # out_ref:      VMEM (TB, E)        output tile, row g = s*B + b
    TB, E = out_ref.shape
    half = E // 2
    t = pl.program_id(0)
    row0 = t * TB

    # --- embedding gather: SMEM ids drive dynamic row loads from the resident table ---
    def gather_row(r, carry):
        tok = ids_ref[row0 + r]
        out_ref[pl.ds(r, 1), :] = table_ref[pl.ds(tok, 1), :]
        return carry

    unroll = 8 if TB % 8 == 0 else 1
    jax.lax.fori_loop(0, TB, gather_row, 0, unroll=unroll)

    # --- rotary positional encoding; sin/cos computed in-kernel (EUP), f32 math ---
    pos = pos_ref[...] + (t * seq_tile).astype(jnp.float32)     # (TB, 1) absolute positions
    ang = pos * inv_freq_ref[...]                                # (TB, half)
    cos = jnp.cos(ang)
    sin = jnp.sin(ang)

    x = out_ref[...].astype(jnp.float32)                         # upcast (bf16 storage ok)
    x1 = x[:, :half]
    x2 = x[:, half:]
    out_ref[...] = jnp.concatenate(
        [x1 * cos - x2 * sin, x1 * sin + x2 * cos], axis=1
    ).astype(out_ref.dtype)


def _choose_ts(seq_len, batch, embed, itemsize=4, budget_bytes=24 << 20):
    """Pick the per-step sequence tile TS.

    Constraints: TS divides S (no padding / wrapper slice), (TS*B) % 8 == 0 so the
    (TS*B, E) output block is sublane-aligned, and the double-buffered output block
    stays within a VMEM budget that is safe on v5e/v6e/v7x. Prefer >= 2 grid steps so
    v7x can shard the 'parallel' axis across its two TensorCores.
    """
    row_bytes = embed * itemsize
    ts_cap = max(1, budget_bytes // (2 * batch * row_bytes))
    divisors = [d for d in range(1, seq_len + 1) if seq_len % d == 0]
    aligned = [d for d in divisors if d <= ts_cap and (d * batch) % 8 == 0]
    if not aligned:
        return seq_len          # single full-array block (always a legal block shape)
    multi_step = [d for d in aligned if seq_len // d >= 2]
    return max(multi_step) if multi_step else max(aligned)


def transformer_input(ids, table):
    """ids: (B, S) int32 token ids; table: (V, E) embedding weights.
    Returns (S, B, E) in table.dtype (matches the PyTorch forward output layout)."""
    B, S = ids.shape
    V, E = table.shape
    assert E % 2 == 0, "embed_size must be even for rotary PE"
    half = E // 2

    itemsize = jnp.dtype(table.dtype).itemsize
    TS = _choose_ts(S, B, E, itemsize=itemsize)
    TB = TS * B
    grid = (S // TS,)

    # Token ids in output-row order (row g = s*B + b), prefetched into SMEM.
    ids_flat = jnp.transpose(ids.astype(jnp.int32), (1, 0)).reshape(S * B)

    # Tiny per-call constants (hoist/cache across calls in a real model).
    inv_freq = (1.0 / (10000.0 ** (jnp.arange(half, dtype=jnp.float32) / half)))[None, :]
    pos_local = jnp.repeat(jnp.arange(TS, dtype=jnp.float32), B)[:, None]      # (TB, 1)

    # Explicit VMEM budget: resident table + streaming out block, both double-buffered,
    # plus the tiny constant blocks (lane-padded) and some slack.
    vmem_limit = (2 * V * E * itemsize + 2 * TB * E * itemsize
                  + 2 * TB * 128 * 4 + 2 * 128 * 4 + (4 << 20))
    vmem_limit = int(min(max(vmem_limit, 32 << 20), 120 << 20))

    kernel = functools.partial(transformer_input_kernel, seq_tile=TS)

    out_flat = pl.pallas_call(
        kernel,
        out_shape=jax.ShapeDtypeStruct((S * B, E), table.dtype),
        grid_spec=pltpu.PrefetchScalarGridSpec(
            num_scalar_prefetch=1,
            grid=grid,
            in_specs=[
                pl.BlockSpec((V, E), lambda t, ids_smem: (0, 0)),       # resident table
                pl.BlockSpec((TB, 1), lambda t, ids_smem: (0, 0)),      # local positions
                pl.BlockSpec((1, half), lambda t, ids_smem: (0, 0)),    # inverse frequencies
            ],
            out_specs=pl.BlockSpec((TB, E), lambda t, ids_smem: (t, 0)),
        ),
        compiler_params=pltpu.CompilerParams(
            dimension_semantics=("parallel",),
            vmem_limit_bytes=vmem_limit,
        ),
    )(ids_flat, table, pos_local, inv_freq)

    # Free reshape: split the leading (S*B) dim -> (S, B, E). No padding, no slice copy.
    return out_flat.reshape(S, B, E)


def transformer_input_ref(ids, table):
    """Pure-JAX reference mirroring the PyTorch module."""
    x = table[ids]                                  # (B, S, E)
    B, S, E = x.shape
    half = E // 2
    theta = 1.0 / (10000.0 ** (jnp.arange(half, dtype=jnp.float32) / half))  # (half,)
    pos = jnp.arange(S, dtype=jnp.float32)[:, None]                          # (S, 1)
    ang = pos * theta                                                        # (S, half)
    sin = jnp.sin(ang)[None]                                                 # (1, S, half)
    cos = jnp.cos(ang)[None]
    x1, x2 = x[..., :half], x[..., half:]
    y = jnp.concatenate([x1 * cos - x2 * sin, x1 * sin + x2 * cos], axis=-1)
    return jnp.transpose(y, (1, 0, 2))              # (S, B, E)


if __name__ == "__main__":
    VOCAB, EMBED, BATCH, SEQ = 64, 128, 2, 8

    key = jax.random.PRNGKey(0)
    k_table, k_ids = jax.random.split(key)
    table = jax.random.normal(k_table, (VOCAB, EMBED), dtype=jnp.float32)   # nn.Embedding weight
    ids = jax.random.randint(k_ids, (BATCH, SEQ), 0, VOCAB, dtype=jnp.int32)

    out = transformer_input(ids, table)
    out = jax.block_until_ready(out)

    expected = transformer_input_ref(ids, table)
    assert out.shape == (SEQ, BATCH, EMBED), out.shape
    assert jnp.allclose(out, expected, atol=1e-4, rtol=1e-4), float(
        jnp.max(jnp.abs(out - expected))
    )

    print("KERNEL_OK")
</pallas_src>

<mosaic_0001>
module attributes {stable_mosaic.version = 11 : i64} {
  func.func @transformer_input_kernel(%arg0: i32, %arg1: memref<16xi32, #tpu.memory_space<smem>>, %arg2: memref<64x128xf32, #tpu.memory_space<vmem>>, %arg3: memref<8x1xf32, #tpu.memory_space<vmem>>, %arg4: memref<1x64xf32, #tpu.memory_space<vmem>>, %arg5: memref<8x128xf32, #tpu.memory_space<vmem>>) attributes {dimension_semantics = [#tpu.dimension_semantics<parallel>], iteration_bounds = array<i64: 2>, scalar_prefetch = 1 : i64, scratch_operands = 0 : i64, tpu.core_type = #tpu.core_type<tc>, window_params = [{pipeline_mode = #tpu.pipeline_mode<synchronous>, transform_indices = @transform_0, window_bounds = array<i64: 64, 128>}, {pipeline_mode = #tpu.pipeline_mode<synchronous>, transform_indices = @transform_1, window_bounds = array<i64: 8, 1>}, {pipeline_mode = #tpu.pipeline_mode<synchronous>, transform_indices = @transform_2, window_bounds = array<i64: 1, 64>}, {transform_indices = @transform_3, window_bounds = array<i64: 8, 128>}]} {
    %c8_i32 = arith.constant 8 : i32
    %0 = arith.muli %arg0, %c8_i32 : i32
    %c0_i32 = arith.constant 0 : i32
    %1 = arith.addi %0, %c0_i32 : i32
    %2 = arith.index_cast %1 : i32 to index
    %3 = memref.load %arg1[%2] : memref<16xi32, #tpu.memory_space<smem>>
    %4 = arith.index_cast %3 : i32 to index
    %c0 = arith.constant 0 : index
    %5 = vector.load %arg2[%4, %c0] : memref<64x128xf32, #tpu.memory_space<vmem>>, vector<1x128xf32>
    %6 = arith.index_cast %c0_i32 : i32 to index
    %c0_0 = arith.constant 0 : index
    %7 = vector.load %arg5[%6, %c0_0] : memref<8x128xf32, #tpu.memory_space<vmem>>, vector<1x128xf32>
    tpu.vector_store %arg5[%6, %c0_0], %5 {strides = array<i32>} : memref<8x128xf32, #tpu.memory_space<vmem>>, vector<1x128xf32>,
    %c1_i32 = arith.constant 1 : i32
    %8 = arith.addi %0, %c1_i32 : i32
    %9 = arith.index_cast %8 : i32 to index
    %10 = memref.load %arg1[%9] : memref<16xi32, #tpu.memory_space<smem>>
    %11 = arith.index_cast %10 : i32 to index
    %c0_1 = arith.constant 0 : index
    %12 = vector.load %arg2[%11, %c0_1] : memref<64x128xf32, #tpu.memory_space<vmem>>, vector<1x128xf32>
    %13 = arith.index_cast %c1_i32 : i32 to index
    %c0_2 = arith.constant 0 : index
    %14 = vector.load %arg5[%13, %c0_2] : memref<8x128xf32, #tpu.memory_space<vmem>>, vector<1x128xf32>
    tpu.vector_store %arg5[%13, %c0_2], %12 {strides = array<i32>} : memref<8x128xf32, #tpu.memory_space<vmem>>, vector<1x128xf32>,
    %c2_i32 = arith.constant 2 : i32
    %15 = arith.addi %0, %c2_i32 : i32
    %16 = arith.index_cast %15 : i32 to index
    %17 = memref.load %arg1[%16] : memref<16xi32, #tpu.memory_space<smem>>
    %18 = arith.index_cast %17 : i32 to index
    %c0_3 = arith.constant 0 : index
    %19 = vector.load %arg2[%18, %c0_3] : memref<64x128xf32, #tpu.memory_space<vmem>>, vector<1x128xf32>
    %20 = arith.index_cast %c2_i32 : i32 to index
    %c0_4 = arith.constant 0 : index
    %21 = vector.load %arg5[%20, %c0_4] : memref<8x128xf32, #tpu.memory_space<vmem>>, vector<1x128xf32>
    tpu.vector_store %arg5[%20, %c0_4], %19 {strides = array<i32>} : memref<8x128xf32, #tpu.memory_space<vmem>>, vector<1x128xf32>,
    %c3_i32 = arith.constant 3 : i32
    %22 = arith.addi %0, %c3_i32 : i32
    %23 = arith.index_cast %22 : i32 to index
    %24 = memref.load %arg1[%23] : memref<16xi32, #tpu.memory_space<smem>>
    %25 = arith.index_cast %24 : i32 to index
    %c0_5 = arith.constant 0 : index
    %26 = vector.load %arg2[%25, %c0_5] : memref<64x128xf32, #tpu.memory_space<vmem>>, vector<1x128xf32>
    %27 = arith.index_cast %c3_i32 : i32 to index
    %c0_6 = arith.constant 0 : index
    %28 = vector.load %arg5[%27, %c0_6] : memref<8x128xf32, #tpu.memory_space<vmem>>, vector<1x128xf32>
    tpu.vector_store %arg5[%27, %c0_6], %26 {strides = array<i32>} : memref<8x128xf32, #tpu.memory_space<vmem>>, vector<1x128xf32>,
    %c4_i32 = arith.constant 4 : i32
    %29 = arith.addi %0, %c4_i32 : i32
    %30 = arith.index_cast %29 : i32 to index
    %31 = memref.load %arg1[%30] : memref<16xi32, #tpu.memory_space<smem>>
    %32 = arith.index_cast %31 : i32 to index
    %c0_7 = arith.constant 0 : index
    %33 = vector.load %arg2[%32, %c0_7] : memref<64x128xf32, #tpu.memory_space<vmem>>, vector<1x128xf32>
    %34 = arith.index_cast %c4_i32 : i32 to index
    %c0_8 = arith.constant 0 : index
    %35 = vector.load %arg5[%34, %c0_8] : memref<8x128xf32, #tpu.memory_space<vmem>>, vector<1x128xf32>
    tpu.vector_store %arg5[%34, %c0_8], %33 {strides = array<i32>} : memref<8x128xf32, #tpu.memory_space<vmem>>, vector<1x128xf32>,
    %c5_i32 = arith.constant 5 : i32
    %36 = arith.addi %0, %c5_i32 : i32
    %37 = arith.index_cast %36 : i32 to index
    %38 = memref.load %arg1[%37] : memref<16xi32, #tpu.memory_space<smem>>
    %39 = arith.index_cast %38 : i32 to index
    %c0_9 = arith.constant 0 : index
    %40 = vector.load %arg2[%39, %c0_9] : memref<64x128xf32, #tpu.memory_space<vmem>>, vector<1x128xf32>
    %41 = arith.index_cast %c5_i32 : i32 to index
    %c0_10 = arith.constant 0 : index
    %42 = vector.load %arg5[%41, %c0_10] : memref<8x128xf32, #tpu.memory_space<vmem>>, vector<1x128xf32>
    tpu.vector_store %arg5[%41, %c0_10], %40 {strides = array<i32>} : memref<8x128xf32, #tpu.memory_space<vmem>>, vector<1x128xf32>,
    %c6_i32 = arith.constant 6 : i32
    %43 = arith.addi %0, %c6_i32 : i32
    %44 = arith.index_cast %43 : i32 to index
    %45 = memref.load %arg1[%44] : memref<16xi32, #tpu.memory_space<smem>>
    %46 = arith.index_cast %45 : i32 to index
    %c0_11 = arith.constant 0 : index
    %47 = vector.load %arg2[%46, %c0_11] : memref<64x128xf32, #tpu.memory_space<vmem>>, vector<1x128xf32>
    %48 = arith.index_cast %c6_i32 : i32 to index
    %c0_12 = arith.constant 0 : index
    %49 = vector.load %arg5[%48, %c0_12] : memref<8x128xf32, #tpu.memory_space<vmem>>, vector<1x128xf32>
    tpu.vector_store %arg5[%48, %c0_12], %47 {strides = array<i32>} : memref<8x128xf32, #tpu.memory_space<vmem>>, vector<1x128xf32>,
    %c7_i32 = arith.constant 7 : i32
    %50 = arith.addi %0, %c7_i32 : i32
    %51 = arith.index_cast %50 : i32 to index
    %52 = memref.load %arg1[%51] : memref<16xi32, #tpu.memory_space<smem>>
    %53 = arith.index_cast %52 : i32 to index
    %c0_13 = arith.constant 0 : index
    %54 = vector.load %arg2[%53, %c0_13] : memref<64x128xf32, #tpu.memory_space<vmem>>, vector<1x128xf32>
    %55 = arith.index_cast %c7_i32 : i32 to index
    %c0_14 = arith.constant 0 : index
    %56 = vector.load %arg5[%55, %c0_14] : memref<8x128xf32, #tpu.memory_space<vmem>>, vector<1x128xf32>
    tpu.vector_store %arg5[%55, %c0_14], %54 {strides = array<i32>} : memref<8x128xf32, #tpu.memory_space<vmem>>, vector<1x128xf32>,
    %c8_i32_15 = arith.constant 8 : i32
    %c0_16 = arith.constant 0 : index
    %c0_17 = arith.constant 0 : index
    %57 = vector.load %arg3[%c0_16, %c0_17] : memref<8x1xf32, #tpu.memory_space<vmem>>, vector<8x1xf32>
    %c4_i32_18 = arith.constant 4 : i32
    %58 = arith.muli %arg0, %c4_i32_18 : i32
    %59 = arith.sitofp %58 : i32 to f32
    %60 = vector.broadcast %59 : f32 to vector<8x1xf32>
    %61 = arith.addf %57, %60 : vector<8x1xf32>
    %c0_19 = arith.constant 0 : index
    %c0_20 = arith.constant 0 : index
    %62 = vector.load %arg4[%c0_19, %c0_20] : memref<1x64xf32, #tpu.memory_space<vmem>>, vector<1x64xf32>
    %63 = vector.broadcast %61 : vector<8x1xf32> to vector<8x64xf32>
    %64 = vector.broadcast %62 : vector<1x64xf32> to vector<8x64xf32>
    %65 = arith.mulf %63, %64 : vector<8x64xf32>
    %66 = math.cos %65 : vector<8x64xf32>
    %67 = math.sin %65 : vector<8x64xf32>
    %c0_21 = arith.constant 0 : index
    %c0_22 = arith.constant 0 : index
    %68 = vector.load %arg5[%c0_21, %c0_22] : memref<8x128xf32, #tpu.memory_space<vmem>>, vector<8x128xf32>
    %69 = vector.extract_strided_slice %68 {offsets = [0, 0], sizes = [8, 64], strides = [1, 1]} : vector<8x128xf32> to vector<8x64xf32>
    %70 = vector.extract_strided_slice %68 {offsets = [0, 64], sizes = [8, 64], strides = [1, 1]} : vector<8x128xf32> to vector<8x64xf32>
    %71 = arith.mulf %69, %66 : vector<8x64xf32>
    %72 = arith.mulf %70, %67 : vector<8x64xf32>
    %73 = arith.subf %71, %72 : vector<8x64xf32>
    %74 = arith.mulf %69, %67 : vector<8x64xf32>
    %75 = arith.mulf %70, %66 : vector<8x64xf32>
    %76 = arith.addf %74, %75 : vector<8x64xf32>
    %77 = tpu.concatenate %73, %76 in 1 : vector<8x64xf32>, vector<8x64xf32> -> vector<8x128xf32>
    %c0_23 = arith.constant 0 : index
    %c0_24 = arith.constant 0 : index
    %78 = vector.load %arg5[%c0_23, %c0_24] : memref<8x128xf32, #tpu.memory_space<vmem>>, vector<8x128xf32>
    tpu.vector_store %arg5[%c0_23, %c0_24], %77 {strides = array<i32>} : memref<8x128xf32, #tpu.memory_space<vmem>>, vector<8x128xf32>,
    return
  }
  func.func @transform_0(%arg0: i32, %arg1: memref<16xi32, #tpu.memory_space<smem>>) -> (i32, i32) {
    %c0_i32 = arith.constant 0 : i32
    %c0_i32_0 = arith.constant 0 : i32
    %c0_i32_1 = arith.constant 0 : i32
    return %c0_i32, %c0_i32_0 : i32, i32
  }
  func.func @transform_1(%arg0: i32, %arg1: memref<16xi32, #tpu.memory_space<smem>>) -> (i32, i32) {
    %c0_i32 = arith.constant 0 : i32
    %c0_i32_0 = arith.constant 0 : i32
    %c0_i32_1 = arith.constant 0 : i32
    return %c0_i32, %c0_i32_0 : i32, i32
  }
  func.func @transform_2(%arg0: i32, %arg1: memref<16xi32, #tpu.memory_space<smem>>) -> (i32, i32) {
    %c0_i32 = arith.constant 0 : i32
    %c0_i32_0 = arith.constant 0 : i32
    %c0_i32_1 = arith.constant 0 : i32
    return %c0_i32, %c0_i32_0 : i32, i32
  }
  func.func @transform_3(%arg0: i32, %arg1: memref<16xi32, #tpu.memory_space<smem>>) -> (i32, i32) {
    %c0_i32 = arith.constant 0 : i32
    %c0_i32_0 = arith.constant 0 : i32
    return %arg0, %c0_i32 : i32, i32
  }
}

</mosaic_0001>

<bundles_post_ra>
// kernel: tpu_custom_call.1
= control target key start
LH: loop header
LB: loop body
LE: loop exit
PB: predicated region body
PF: predicated region fallthrough
CT: control target
= control target key end

     0   :  { %s965_s0 = inlined_call_operand.vmem [shape: s32[16], index: 0, kind: input, shape index: {}]   ;;  %s966_s1 = inlined_call_operand.hbm [shape: f32[64,128], index: 1, kind: input, shape index: {}]   ;;  %s967_s2 = inlined_call_operand.vmem [shape: f32[8,1], index: 2, kind: input, shape index: {}]   ;;  %s968_s3 = inlined_call_operand.vmem [shape: f32[1,64], index: 3, kind: input, shape index: {}]   ;;  %s969_s4 = inlined_call_operand.hbm [shape: f32[16,128], index: 4, kind: output, shape index: {}]  }
   0x1   :  { %974 = sst [smem:[#allocation11_spill]] %s966_s1  ;;  %s9_s17 = sshll.u32 %s965_s0, 4  ;;  %s10_s17 = int_to_ptr.vmem [resolvable:$true] %s9_s17 }
   0x2   :  { %975 = sst [smem:[#allocation12_spill]] %s967_s2  ;;  %s638_s18 = scalar_lea.vmem %s10_s17, 16 }
   0x3   :  { %p639_p0 = scmp.ne.s32.totalorder %s10_s17, %s638_s18  ;;  %p643_p1 = scmp.lt.s32.totalorder %s10_s17, %s10_s17 }
   0x4   :  { %p644_p2 = scmp.lt.s32.totalorder %s638_s18, %s638_s18 }
   0x6   :  { %p645_p3 = por %p644_p2, %p643_p1 }
   0x8   :  { %p646_p4 = pnand %p645_p3, %p639_p0 }
   0xa   :  { %649 = shalt.err (!%p646_p4)  }
   0xb   :  { %s748_s19 = smov [#allocation3]  }
   0xc   :  { %12 = dma.vmem_to_smem %s10_s17, 16, %s748_s19, [#allocation2] }
   0xd   :  { %722 = dma.done.wait [#allocation2], 16 }
   0xe   :  { %723 = vsyncadd [#allocation2], 4294967280 }
   0xf   :  { %14 = sfence }
  0x10   :  { %15 = vsyncpa [#allocation5], 0 }
  0x11   :  { %16 = vsyncpa [#allocation6], 0 }
  0x12   :  { %18 = vsyncpa [#allocation6 + $0x1], 0  ;;  %s789_s20 = smov 0   ;;  %s791_s21 = smov 0  }
  0x13   :  { %s793_s0 = smov 0   ;;  %s795_s22 = smov 0  }
  0x14 LB: > { %s810_s23 = sadd.s32 4294967295, %s746_s22   ;;  %s547_s24 = sadd.s32 4294967294, %s746_s22   ;;  %s746_s22 = sphi %s795_s22, %s991_s22   ;;  %s742_s0 = sphi %s793_s0, %s990_s0   ;;  %s738_s21 = sphi %s791_s21, %s989_s21   ;;  %s734_s20 = sphi %s789_s20, %s988_s20  }
  0x15   : > { %s814_s25 = sadd.s32 1, %s746_s22   ;;  %s94_s26 = sadd.s32 1, %s742_s0 }
  0x16   : > { %s91_s27 = ssub.s32 %s746_s22, %s814_s25  ;;  %p104_p5 = scmp.ne.s32.totalorder %s742_s0, %s738_s21 }
  0x17   : > { %p92_p6 = scmp.eq.s32.totalorder %s91_s27, 0  ;;  %p105_p7 = scmp.eq.s32.totalorder %s810_s23, 1 }
  0x18   : > { %p110_p8 = scmp.ne.s32.totalorder %s738_s21, %s734_s20  ;;  %p111_p9 = scmp.eq.s32.totalorder %s547_s24, 1 }
  0x19   : > { %s825_s28 = scalar_select %p92_p6, %s742_s0, %s94_s26  }
  0x1a   : > { %p827_p10 = por %p105_p7, %p104_p5  ;;  %p831_p11 = por %p111_p9, %p110_p8 }
  0x1b   : > { %p548_p12 = scmp.ge.s32.totalorder %s746_s22, 1  ;;  %p118_p13 = scmp.lt.s32.totalorder %s746_s22, 3 }
  0x1c   : > { %s976_s29 = scalar_select %p827_p10, 1, 0 }
  0x1d   : > { %s977_s30 = scalar_select %p831_p11, 1, 0 }
  0x1e   : > { %p970_p0 = scmp.eq.s32.totalorder %s810_s23, 0  ;;  %p838_p1 = pnand %p548_p12, %p118_p13 }
  0x1f   : > { %s749_s6 = smov [#allocation4]   ;;  %s980_s1 = sld [smem:[#allocation11_spill]] }
  0x20   : > { %s978_s5 = scalar_select %p838_p1, 1, 0 }
  0x21   : > { %s130_s7 = sshll.u32 %s749_s6, 4  ;;  %p578_p2 = pneg %p838_p1  ;;  %s131_s7 = int_to_ptr.vmem [resolvable:$true] %s130_s7 }
  0x23   : > { %p846_p3 = pnand %p970_p0, %p578_p2 }
  0x25   : > { %s650_s11 = scalar_lea.hbm %s980_s1, 1024  ;;  %p652_p5 = pneg %p846_p3 }
  0x26   : > { %p651_p4 = scmp.ne.s32.totalorder %s980_s1, %s650_s11  ;;  %p657_p8 = scmp.lt.u32.totalorder %s650_s11, %s980_s1 }
  0x28   : > { %p653_p6 = pnand %p652_p5, %p651_p4 }
  0x2a   : > { %p654_p7 = pneg %p653_p6 }
  0x2c   : > { %p659_p9 = pnand %p657_p8, %p654_p7 }
  0x2e   : > { %662 = shalt.err (!%p659_p9)
}
  0x2f   : > { %s663_s16 = scalar_lea.vmem %s131_s7, 1024  ;;  %p671_p0 = scmp.lt.s32.totalorder %s131_s7, %s131_s7 }
  0x30   : > { %p664_p12 = scmp.ne.s32.totalorder %s131_s7, %s663_s16  ;;  %p672_p11 = scmp.lt.s32.totalorder %s663_s16, %s663_s16 }
  0x32   : > { %p666_p13 = pnand %p664_p12, %p652_p5  ;;  %p673_p10 = por %p672_p11, %p671_p0 }
  0x34   : > { %p667_p2 = pneg %p666_p13 }
  0x36   : > { %p674_p1 = pnand %p673_p10, %p667_p2 }
  0x38   : > { %677 = shalt.err (!%p674_p1)
}
  0x39   : > { %s750_s17 = smov 128   ;;  %s751_s18 = smov 8  }
  0x3a   : > { %581 = dma.hbm_to_vmem [thread:$0]  (!%p846_p3), %s980_s1, 1024, %s131_s7, [#allocation5], %s750_s17, %s750_s17, %s751_s18  }
  0x3b   : > { %p981_p4 = scmp.ne.s32.totalorder %s978_s5, 0 }
  0x3c   : > { %p982_p6 = scmp.eq.s32.totalorder (!%p981_p4), %s810_s23, 0 }
  0x3d   : > { %152 = sbr.rel (%p981_p4) target bundleno = 651 (0x28b), region = 32 }
  0x44   : > { %725 = dma.done.wait (%p982_p6), [#allocation5], 1024   ;;  %p983_p5 = pmov %p982_p6 }
  0x45   : > { %s554_s26 = sshll.u32 %s810_s23, 2  ;;  %v752_v0 = vmov 0   ;;  %s984_s2 = sld [smem:[#allocation12_spill]]  ;;  %v555_v12 = vld [vmem:[%s968_s3] ss:$0 sm:$0xff] }
  0x46   : > { %727 = vsyncadd (%p983_p5), [#allocation5], 4294966272  ;;  %633 = vset.pattern.permute.xlu0 %v752_v0  ;;  %s213_s27 = scvt.s32.f32 %s554_s26  ;;  %s973_s5 = sand.u32 1, %s738_s21   ;;  %v753_v26 = vmov 2102212464  }
  0x47   : > { %s553_s8 = sshll.u32 %s810_s23, 3  ;;  %s552_s9 = sshll.u32 %s973_s5, 3  ;;  %v754_v28 = vmov 920167782   ;;  %v755_v32 = vmov 1326507024  }
  0x48   : > { %v214_v1 = vstv %s213_s27  ;;  %s176_s10 = sadd.s32 1, %s553_s8  ;;  %s181_s11 = sadd.s32 2, %s553_s8  ;;  %v756_v34 = vmov 683565275   ;;  %v757_v36 = vmov 2475754826  }
  0x49   : > { %s186_s12 = sadd.s32 3, %s553_s8  ;;  %s191_s13 = sadd.s32 4, %s553_s8  ;;  %v758_v39 = vmov 2131351028  }
  0x4a   : > { %s196_s14 = sadd.s32 5, %s553_s8  ;;  %s201_s15 = sadd.s32 6, %s553_s8 }
  0x4b   : > { %v211_v2 = vld [vmem:[%s984_s2] sm:$0xff]  ;;  %s206_s16 = sadd.s32 7, %s553_s8  ;;  %s172_s17 = sld [smem:[#allocation3 + %s553_s8]] }
  0x4c   : > { %v215_v3 = vadd.f32 %v214_v1, %v211_v2  ;;  %s177_s18 = sld [smem:[#allocation3 + %s176_s10]]  ;;  %s880_s5 = scalar_lea.vmem [#allocation7], %s552_s9 }
  0x4d   : > { %s182_s19 = sld [smem:[#allocation3 + %s181_s11]]  ;;  %p986_p11 = scmp.ne.s32.totalorder %s976_s29, 0 }
  0x4e   : > { %219 = vperm.xlu0 %633, %v215_v3   ;;  %s187_s24 = sld [smem:[#allocation3 + %s186_s12]] }
  0x4f   : > { %s192_s26 = sld [smem:[#allocation3 + %s191_s13]] }
  0x50   : > { %s197_s27 = sld [smem:[#allocation3 + %s196_s14]]  ;;  %s759_s14 = smov 64  }
  0x51   : > { %s202_s6 = sld [smem:[#allocation3 + %s201_s15]]  ;;  %s173_s1 = scalar_lea.vmem [#allocation4], %s172_s17 }
  0x52   : > { %s207_s7 = sld [smem:[#allocation3 + %s206_s16]]  ;;  %v174_v4 = vld [vmem:[%s173_s1] sm:$0x1]  ;;  %s178_s2 = scalar_lea.vmem [#allocation4], %s177_s18 }
  0x53   : > { %v179_v5 = vld [vmem:[%s178_s2] sm:$0x1]  ;;  %175 = vst [vmem:[%s880_s5] sm:$0x1] %v174_v4  ;;  %s183_s8 = scalar_lea.vmem [#allocation4], %s182_s19  ;;  %s565_s15 = sshll.u32 %s810_s23, 7 }
  0x54   : > { %180 = vst [vmem:[%s880_s5 + $0x1] sm:$0x1] %v179_v5  ;;  %v184_v6 = vld [vmem:[%s183_s8] sm:$0x1]  ;;  %s188_s10 = scalar_lea.vmem [#allocation4], %s187_s24  ;;  %s480_s16 = sshll.u32 %s880_s5, 4  ;;  %s922_s16 = int_to_ptr.vmem [resolvable:$true] %s480_s16 }
  0x55   : > { %v189_v7 = vld [vmem:[%s188_s10] sm:$0x1]  ;;  %185 = vst [vmem:[%s880_s5 + $0x2] sm:$0x1] %v184_v6  ;;  %s193_s1 = scalar_lea.vmem [#allocation4], %s192_s26  ;;  %s920_s19 = scalar_lea.hbm %s969_s4, %s565_s15 }
  0x56   : > { %190 = vst [vmem:[%s880_s5 + $0x3] sm:$0x1] %v189_v7  ;;  %v194_v8 = vld [vmem:[%s193_s1] sm:$0x1]  ;;  %s198_s2 = scalar_lea.vmem [#allocation4], %s197_s27  ;;  %s985_s24 = sand.u32 1, %s738_s21  }
  0x57   : > { %v199_v9 = vld [vmem:[%s198_s2] sm:$0x1]  ;;  %195 = vst [vmem:[%s880_s5 + $0x4] sm:$0x1] %v194_v8  ;;  %s203_s9 = scalar_lea.vmem [#allocation4], %s202_s6  ;;  %s467_s26 = scalar_lea.sflag [#allocation6], %s985_s24 }
  0x58   : > { %200 = vst [vmem:[%s880_s5 + $0x5] sm:$0x1] %v199_v9  ;;  %v204_v10 = vld [vmem:[%s203_s9] sm:$0x1]  ;;  %s208_s11 = scalar_lea.vmem [#allocation4], %s207_s7  ;;  %s678_s27 = scalar_lea.vmem %s922_s16, 128 }
  0x59   : > { %v209_v11 = vld [vmem:[%s208_s11] sm:$0x1]  ;;  %205 = vst [vmem:[%s880_s5 + $0x6] sm:$0x1] %v204_v10  ;;  %p679_p10 = scmp.ne.s32.totalorder %s922_s16, %s678_s27  ;;  %s760_s23 = smov [#allocation7]  }
  0x5a   : > { %210 = vst [vmem:[%s880_s5 + $0x7] sm:$0x1] %v209_v11  ;;  %s682_s6 = sshll.u32 %s760_s23, 4  ;;  %s683_s6 = int_to_ptr.vmem [resolvable:$false] %s682_s6 }
  0x5b   : > { %p680_p0 = pnand %p679_p10, %p986_p11  ;;  %s684_s7 = scalar_lea.vmem %s683_s6, 256 }
  0x5c   : > { %p685_p3 = scmp.lt.s32.totalorder %s922_s16, %s683_s6  ;;  %p686_p7 = scmp.lt.s32.totalorder %s684_s7, %s678_s27 }
  0x5d   : > { %p681_p1 = pneg %p680_p0 }
  0x5e   : > { %p687_p8 = por %p686_p7, %p685_p3 }
  0x60   : > { %p688_p9 = pnand %p687_p8, %p681_p1 }
  0xcd   : > { %v220_v13 = vpop.permute.xlu0 %219 }
  0xce   : > { %v893_v14 = vmul.f32 %v555_v12, %v220_v13 }
  0xd0   : > { %v232_v15 = vand.u32 2139095040, %v893_v14  ;;  %v229_v16 = vand.u32 2147483647, %v893_v14  ;;  %vm231_vm7 = vcmp.lt.s32.totalorder %v893_v14, 0  ;;  %vm321_vm15 = vweird.f32 %v893_v14 }
  0xd2   : > { %v233_v17 = vshrl.u32 %v232_v15, 23  ;;  %v236_v19 = vand.u32 8388607, %v229_v16  ;;  %vm230_vm8 = vcmp.le.f32.partialorder %v229_v16, 0.7853982 }
  0xd4   : > { %v556_v18 = vadd.s32 4294967169, %v233_v17  ;;  %v237_v22 = vor.u32 8388608, %v236_v19 }
  0xd6   : > { %v239_v20 = vadd.s32 1, %v556_v18  ;;  %v277_v30 = vshll.u32 %v237_v22, 8 }
  0xd8   : > { %vm240_vm0 = vcmp.gt.s32.totalorder %v239_v20, 0 }
  0xd9   : > { %v241_v21 = vsel %vm240_vm0, %v239_v20, 0  ;;  %vm463_vm0 = vcmask 523264  }
  0xda   : > { %v243_v23 = vand.u32 31, %v241_v21  ;;  %v242_v24 = vshrl.u32 %v241_v21, 5 }
  0xdc   : > { %v244_v25 = vsub.s32 32, %v243_v23  ;;  %v255_v27 = vshll.u32 %v753_v26, %v243_v23  ;;  %v258_v29 = vshll.u32 %v754_v28, %v243_v23  ;;  %v246_v35 = vshll.u32 %v756_v34, %v243_v23 }
  0xdd   : > { %v249_v38 = vshll.u32 %v757_v36, %v243_v23  ;;  %v252_v41 = vshll.u32 %v758_v39, %v243_v23  ;;  %vm264_vm1 = vcmp.lt.s32.totalorder %v242_v24, 4  ;;  %vm261_vm2 = vcmp.lt.s32.totalorder %v242_v24, 1 }
  0xde   : > { %v256_v31 = vshrl.u32 %v754_v28, %v244_v25  ;;  %v259_v33 = vshrl.u32 %v755_v32, %v244_v25  ;;  %v247_v37 = vshrl.u32 %v757_v36, %v244_v25  ;;  %v250_v40 = vshrl.u32 %v758_v39, %v244_v25 }
  0xdf   : > { %v253_v42 = vshrl.u32 %v753_v26, %v244_v25  ;;  %v245_v46 = vshrl.u32 %v756_v34, %v244_v25  ;;  %vm262_vm3 = vcmp.lt.s32.totalorder %v242_v24, 2  ;;  %vm263_vm4 = vcmp.lt.s32.totalorder %v242_v24, 3 }
  0xe0   : > { %v257_v43 = vor.u32 %v256_v31, %v255_v27  ;;  %v260_v44 = vor.u32 %v259_v33, %v258_v29  ;;  %v248_v45 = vor.u32 %v247_v37, %v246_v35  ;;  %v251_v47 = vor.u32 %v250_v40, %v249_v38 }
  0xe1   : > { %v254_v48 = vor.u32 %v253_v42, %v252_v41 }
  0xe2   : > { %v270_v49 = vsel %vm264_vm1, %v257_v43, 920167782  ;;  %v274_v50 = vsel %vm264_vm1, %v260_v44, 1326507024  ;;  %v269_v52 = vsel %vm261_vm2, %v248_v45, %v251_v47  ;;  %v265_v55 = vsel %vm261_vm2, %v245_v46, %v248_v45 }
  0xe3   : > { %v266_v51 = vsel %vm264_vm1, %v254_v48, 2102212464  ;;  %v271_v53 = vsel %vm263_vm4, %v254_v48, %v270_v49  ;;  %v273_v54 = vsel %vm261_vm2, %v251_v47, %v254_v48  ;;  %v275_v58 = vsel %vm263_vm4, %v257_v43, %v274_v50  ;;  %v436_v48 = vld [vmem:[%s880_s5] sm:$0xff] }
  0xe4   : > { %v267_v56 = vsel %vm263_vm4, %v251_v47, %v266_v51  ;;  %v272_v57 = vsel %vm262_vm3, %v269_v52, %v271_v53  ;;  %v276_v59 = vsel %vm262_vm3, %v273_v54, %v275_v58 }
  0xe5   : > { %v899_v60 = vmul.u32.u64.low %v277_v30, %v272_v57  ;;  %v900_v61 = vmul.u32.u64.high %v277_v30, %v272_v57, %v899_v60  ;;  %v902_v62 = vmul.u32.u64.low %v277_v30, %v276_v59  ;;  %v903_v63 = vmul.u32.u64.high %v277_v30, %v276_v59, %v902_v62 }
  0xe6   : > { %v268_v0 = vsel %vm262_vm3, %v265_v55, %v267_v56 }
  0xe7   : > { %v287_v1 = vadd.s32 1, %v900_v61  ;;  %v284_v2 = vmul.u32 %v277_v30, %v268_v0  ;;  %vm286_vm5 = vc.u32 %v903_v63, %v899_v60  ;;  %v285_v15 = vadd.s32 %v899_v60, %v903_v63 }
  0xe9   : > { %v288_v3 = vsel %vm286_vm5, %v287_v1, %v900_v61 }
  0xea   : > { %v289_v4 = vadd.s32 %v288_v3, %v284_v2 }
  0xec   : > { %v290_v5 = vadd.s32 536870912, %v289_v4 }
  0xee   : > { %v291_v6 = vshrl.u32 %v290_v5, 30 }
  0xf0   : > { %v292_v7 = vshll.u32 %v291_v6, 30  ;;  %v315_v28 = vsub.s32 4, %v291_v6 }
  0xf2   : > { %v293_v8 = vsub.s32 %v289_v4, %v292_v7  ;;  %v316_v31 = vsel %vm231_vm7, %v315_v28, %v291_v6 }
  0xf3   : > { %v318_v33 = vsel %vm230_vm8, 0, %v316_v31 }
  0xf4   : > { %v295_v9 = vsub.s32 0, %v293_v8  ;;  %v425_v34 = vadd.s32 3, %v318_v33  ;;  %v322_v36 = vand.u32 3, %v318_v33 }
  0xf6   : > { %v557_v10 = vmin.u32 %v295_v9, %v293_v8  ;;  %v426_v35 = vand.u32 3, %v425_v34  ;;  %vm327_vm10 = vcmp.eq.s32.totalorder %v322_v36, 2  ;;  %vm324_vm12 = vcmp.eq.s32.totalorder %v322_v36, 0 }
  0xf7   : > { %vm323_vm14 = vcmp.lt.s32.totalorder %v322_v36, 2 }
  0xf8   : > { %v297_v11 = vclz %v557_v10  ;;  %vm431_vm9 = vcmp.eq.s32.totalorder %v426_v35, 2  ;;  %vm428_vm11 = vcmp.eq.s32.totalorder %v426_v35, 0  ;;  %vm427_vm13 = vcmp.lt.s32.totalorder %v426_v35, 2 }
  0xfa   : > { %v558_v12 = vadd.s32 4294967294, %v297_v11 }
  0xfc   : > { %vm559_vm6 = vcmp.lt.s32.totalorder %v558_v12, 0 }
  0xfd   : > { %v300_v13 = vsel %vm559_vm6, 0, %v558_v12 }
  0xfe   : > { %v301_v17 = vsub.s32 32, %v300_v13  ;;  %v305_v18 = vsub.s32 4294967266, %v300_v13  ;;  %v302_v19 = vshll.u32 %v293_v8, %v300_v13 }
 0x100   : > { %v303_v20 = vshrl.u32 %v285_v15, %v301_v17  ;;  %v306_v21 = vadd.s32 127, %v305_v18 }
 0x102   : > { %v304_v22 = vor.u32 %v303_v20, %v302_v19  ;;  %v307_v23 = vshll.u32 %v306_v21, 23 }
 0x104   : > { %v308_v24 = vor.u32 4788187, %v307_v23  ;;  %v311_v26 = vcvt.s32.f32 %v304_v22 }
 0x106   : > { %v309_v25 = vand.u32 2147483647, %v308_v24 }
 0x108   : > { %v312_v27 = vmul.f32 %v311_v26, %v309_v25 }
 0x10a   : > { %v313_v29 = vxor.u32 2147483648, %v312_v27 }
 0x10c   : > { %v314_v30 = vsel %vm231_vm7, %v313_v29, %v312_v27 }
 0x10d   : > { %v317_v32 = vsel %vm230_vm8, %v893_v14, %v314_v30 }
 0x10e   : > { %634 = vcosq.f32 %v317_v32 }
 0x10f   : > { %636 = vsinq.f32 %v317_v32 }
 0x118   : > { %v635_v37 = vpop.eup %634 }
 0x119   : > { %v637_v38 = vpop.eup %636  ;;  %v328_v39 = vxor.u32 2147483648, %v635_v37 }
 0x11a   : > { %v325_v40 = vxor.u32 2147483648, %v637_v38 }
 0x11b   : > { %v433_v41 = vsel %vm431_vm9, %v328_v39, %v637_v38  ;;  %v329_v16 = vsel %vm327_vm10, %v328_v39, %v637_v38 }
 0x11c   : > { %v430_v42 = vsel %vm428_vm11, %v635_v37, %v325_v40  ;;  %v326_v43 = vsel %vm324_vm12, %v635_v37, %v325_v40 }
 0x11d   : > { %v434_v44 = vsel %vm427_vm13, %v430_v42, %v433_v41  ;;  %v330_v45 = vsel %vm323_vm14, %v326_v43, %v329_v16 }
 0x11e   : > { %v435_v46 = vsel %vm321_vm15, nan, %v434_v44  ;;  %v331_v47 = vsel %vm321_vm15, nan, %v330_v45 }
 0x11f   : > { %439 = vrot.lane.b32.xlu1 %v435_v46, %s759_s14  ;;  %450 = vrot.lane.b32.xlu0 %v331_v47, %s759_s14  ;;  %v448_v53 = vmul.f32 %v436_v48, %v435_v46  ;;  %v437_v56 = vmul.f32 %v436_v48, %v331_v47 }
 0x191   : > { %v440_v49 = vpop.permute.xlu1 %439  ;;  %v451_v50 = vpop.permute.xlu0 %450 }
 0x192   : > { %v442_v51 = vmul.f32 %v440_v49, %v436_v48  ;;  %v453_v52 = vmul.f32 %v451_v50, %v436_v48 }
 0x194   : > { %455 = vrot.lane.b32.xlu1 %v453_v52, %s759_s14  ;;  %444 = vrot.lane.b32.xlu0 %v442_v51, %s759_s14 }
 0x206   : > { %v456_v14 = vpop.permute.xlu1 %455  ;;  %v445_v55 = vpop.permute.xlu0 %444 }
 0x207   : > { %v458_v54 = vadd.f32 %v456_v14, %v448_v53  ;;  %v447_v57 = vsub.f32 %v437_v56, %v445_v55 }
 0x209   : > { %460 = vrot.lane.b32.xlu1 %v458_v54, %s759_s14 }
 0x27b   : > { %v461_v58 = vpop.permute.xlu1 %460 }
 0x27c   : > { %v464_v59 = vsel %vm463_vm0, %v447_v57, %v461_v58 }
 0x27d   : > { %465 = vst [vmem:[%s880_s5] sm:$0xff] %v464_v59 }
 0x27e   : > { %691 = shalt.err (!%p688_p9)
}
 0x27f   : > { %s692_s5 = scalar_lea.hbm %s920_s19, 128  ;;  %s696_s1 = scalar_lea.hbm %s969_s4, 256 }
 0x280   : > { %p693_p12 = scmp.ne.s32.totalorder %s920_s19, %s692_s5  ;;  %p697_p4 = scmp.lt.u32.totalorder %s920_s19, %s969_s4 }
 0x281   : > { %p698_p6 = scmp.lt.u32.totalorder %s696_s1, %s692_s5  ;;  %p700_p10 = scmp.lt.u32.totalorder %s692_s5, %s920_s19 }
 0x282   : > { %p694_p13 = pnand %p693_p12, %p986_p11 }
 0x283   : > { %p699_p5 = por %p698_p6, %p697_p4 }
 0x284   : > { %p695_p2 = pneg %p694_p13 }
 0x285   : > { %p701_p0 = por %p700_p10, %p699_p5 }
 0x287   : > { %p702_p1 = pnand %p701_p0, %p695_p2 }
 0x289   : > { %705 = shalt.err (!%p702_p1)
}
 0x28a   : > { %576 = dma.vmem_to_hbm [thread:$0]  (%p986_p11), %s922_s16, 128, %s920_s19, %s467_s26  }
 0x28b PF: > { %p588_p3 = scmp.ge.s32.totalorder %s746_s22, 2  ;;  %s492_s11 = sand.u32 1, %s734_s20  }
 0x28c   : > { %p987_p7 = scmp.ne.s32.totalorder %s977_s30, 0  ;;  %s493_s12 = scalar_lea.sflag [#allocation6], %s492_s11 }
 0x28e   : > { %p583_p8 = pnand %p588_p3, %p987_p7 }
 0x290   : > { %729 = dma.done.wait (!%p583_p8), %s493_s12, 128  }
 0x291   : > { %731 = vsyncadd (!%p583_p8), %s493_s12, 4294967168  ;;  %p21_p9 = scmp.ge.s32.totalorder %s814_s25, 4   ;;  %s988_s20 = smov %s738_s21 }
 0x292   : > { %s989_s21 = smov %s742_s0  ;;  %s990_s0 = smov %s825_s28 }
 0x293   : > { %s991_s22 = smov %s814_s25  ;;  %23 = sbr.rel (!%p21_p9) target bundleno = 20 (0x14), region = 77 }
 0x29a   :  { %498 = vsyncpa [#allocation5], 1 }
 0x29b   :  { %500 = vsyncpa [#allocation5 + $0x1], 1 }
 0x29c   :  { %501 = vsyncpa [#allocation6], 1 }
 0x29d   :  { %503 = vsyncpa [#allocation6 + $0x1], 1 }

</bundles_post_ra>
